<compile_context>
chip_gen: v5e
topology: v5e:2x2
jax: 0.10.0
libtpu: 0.0.40
codegen_flags: <defaults>
</compile_context>

<pallas_src>
import functools

import jax
import jax.numpy as jnp
from jax import lax
from jax.experimental import pallas as pl
from jax.experimental.pallas import tpu as pltpu

_LANE = 128
_SUBLANE = 8

_ACTIVATIONS = {
    "relu": lambda x: jnp.maximum(x, 0.0),
    "sigmoid": jax.nn.sigmoid,
    "tanh": jnp.tanh,
}


def _round_up(n, m):
    return ((n + m - 1) // m) * m


# ---------------------------------------------------------------------------
# Fused Pallas kernel: (dot + bias + act) * (L-1)  ->  dot + bias + softmax
# ---------------------------------------------------------------------------

def _fused_mlp_kernel(x_ref, *refs, n_layers, act_name, n_classes):
    """refs = (w_0, b_0, w_1, b_1, ..., w_{L-1}, b_{L-1}, out_ref).

    All intermediates live in VMEM/vregs for the current batch tile; only the
    final softmax probabilities are written back.
    """
    o_ref = refs[-1]
    act = _ACTIVATIONS[act_name]

    h = x_ref[...]  # (tile_m, K0_pad) f32
    for i in range(n_layers):
        w = refs[2 * i][...]        # (K_pad, N_pad) bf16, zero-padded
        b = refs[2 * i + 1][...]    # (1, N_pad)     f32, zero-padded
        # bf16 operands, f32 accumulation on the MXU.
        s = jnp.dot(h.astype(jnp.bfloat16), w,
                    preferred_element_type=jnp.float32) + b
        if i < n_layers - 1:
            h = act(s)              # padded cols feed zero weight rows next layer
        else:
            # Row softmax over the valid classes only (mask padded lanes).
            col = lax.broadcasted_iota(jnp.int32, s.shape, 1)
            s = jnp.where(col < n_classes, s, -1e30)
            m = jnp.max(s, axis=1, keepdims=True)
            e = jnp.exp(s - m)
            denom = jnp.sum(e, axis=1, keepdims=True)
            o_ref[...] = e * pl.reciprocal(denom, approx=True)


# ---------------------------------------------------------------------------
# PTDeep equivalent (init='normal', bn=False path)
# ---------------------------------------------------------------------------

class PTDeepPallas:
    """JAX/Pallas equivalent of PTDeep(neurons_per_layer, activation, init='normal', bn=False)."""

    def __init__(self, neurons_per_layer, activation_name, key):
        assert len(neurons_per_layer) > 1
        assert activation_name in _ACTIVATIONS
        # TODO(synk): bn=True path (running mean/var momentum updates) is stateful
        # across forward calls and is not implemented here.
        self.neurons_per_layer = list(neurons_per_layer)
        self.activation_name = activation_name
        self.n_classes = neurons_per_layer[-1]
        self.in_pad = _round_up(neurons_per_layer[0], _LANE)
        self.out_pad = _round_up(neurons_per_layer[-1], _LANE)

        # Parameters are stored pre-padded: weights in bf16 (halves DMA bytes),
        # biases in f32 with shape (1, N_pad) so no per-forward reshape is needed.
        self.weights = []
        self.biases = []
        keys = jax.random.split(key, len(neurons_per_layer) - 1)
        for i in range(1, len(neurons_per_layer)):
            n_in, n_out = neurons_per_layer[i - 1], neurons_per_layer[i]
            kp, np_ = _round_up(n_in, _LANE), _round_up(n_out, _LANE)
            # init == 'normal': W ~ N(0, 1), b = 0 (matches torch.randn / zeros)
            w = jax.random.normal(keys[i - 1], (n_in, n_out), dtype=jnp.float32)
            w_pad = jnp.zeros((kp, np_), jnp.float32).at[:n_in, :n_out].set(w)
            self.weights.append(w_pad.astype(jnp.bfloat16))
            self.biases.append(jnp.zeros((1, np_), jnp.float32))

    def forward(self, x, tile_m=256):
        M, D = x.shape
        assert D == self.neurons_per_layer[0]

        # Pad batch to a sublane multiple, tile it, pad features to 128 lanes.
        m8 = _round_up(M, _SUBLANE)
        tm = min(tile_m, m8)
        mp = _round_up(m8, tm)
        x_pad = jnp.zeros((mp, self.in_pad), jnp.float32).at[:M, :D].set(x)

        n_layers = len(self.weights)
        grid = (mp // tm,)

        in_specs = [pl.BlockSpec((tm, self.in_pad), lambda i: (i, 0))]
        operands = [x_pad]
        flops = 0
        bytes_accessed = x_pad.size * 4
        for w, b in zip(self.weights, self.biases):
            kp, np_ = w.shape
            # Weights/biases are full-array blocks, resident across the batch grid.
            in_specs.append(pl.BlockSpec((kp, np_), lambda i: (0, 0)))
            in_specs.append(pl.BlockSpec((1, np_), lambda i: (0, 0)))
            operands.extend([w, b])
            flops += 2 * mp * kp * np_
            bytes_accessed += w.size * 2 + b.size * 4
        bytes_accessed += mp * self.out_pad * 4

        kernel = functools.partial(
            _fused_mlp_kernel,
            n_layers=n_layers,
            act_name=self.activation_name,
            n_classes=self.n_classes,
        )

        out = pl.pallas_call(
            kernel,
            out_shape=jax.ShapeDtypeStruct((mp, self.out_pad), jnp.float32),
            grid=grid,
            in_specs=in_specs,
            out_specs=pl.BlockSpec((tm, self.out_pad), lambda i: (i, 0)),
            compiler_params=pltpu.CompilerParams(
                dimension_semantics=("parallel",)),
            cost_estimate=pl.CostEstimate(
                flops=flops,
                transcendentals=mp * self.out_pad,
                bytes_accessed=bytes_accessed),
        )(*operands)

        # Strip batch / class padding outside the kernel (lane-dense store inside).
        return out[:M, :self.n_classes]


# ---------------------------------------------------------------------------
# Pure-JAX reference (same padded bf16 weights) for correctness checking
# ---------------------------------------------------------------------------

def reference_forward(model, x):
    M, D = x.shape
    h = jnp.zeros((M, model.in_pad), jnp.float32).at[:, :D].set(x)
    act = _ACTIVATIONS[model.activation_name]
    n_layers = len(model.weights)
    s = None
    for i in range(n_layers):
        s = jnp.dot(h.astype(jnp.bfloat16), model.weights[i],
                    preferred_element_type=jnp.float32) + model.biases[i]
        if i < n_layers - 1:
            h = act(s)
    logits = s[:, :model.n_classes]
    return jax.nn.softmax(logits, axis=1)


# ---------------------------------------------------------------------------
# Demo / smoke test
# ---------------------------------------------------------------------------

if __name__ == "__main__":
    key = jax.random.PRNGKey(0)
    k_params, k_x = jax.random.split(key)

    neurons_per_layer = [16, 32, 10]   # D_in=16 -> hidden 32 -> 10 classes
    batch = 8

    model = PTDeepPallas(neurons_per_layer, "relu", k_params)
    x = jax.random.normal(k_x, (batch, neurons_per_layer[0]), dtype=jnp.float32)

    probs = jax.block_until_ready(model.forward(x))
    probs_ref = jax.block_until_ready(reference_forward(model, x))

    assert probs.shape == (batch, neurons_per_layer[-1])
    row_sums = jnp.sum(probs, axis=1)
    assert bool(jnp.all(jnp.abs(row_sums - 1.0) < 1e-2))
    assert bool(jnp.allclose(probs, probs_ref, atol=1e-2))

    print("KERNEL_OK")
</pallas_src>

<mosaic_0001>
module attributes {stable_mosaic.version = 11 : i64} {
  func.func @_fused_mlp_kernel(%arg0: i32, %arg1: memref<8x128xf32, #tpu.memory_space<vmem>>, %arg2: memref<128x128xbf16, #tpu.memory_space<vmem>>, %arg3: memref<1x128xf32, #tpu.memory_space<vmem>>, %arg4: memref<128x128xbf16, #tpu.memory_space<vmem>>, %arg5: memref<1x128xf32, #tpu.memory_space<vmem>>, %arg6: memref<8x128xf32, #tpu.memory_space<vmem>>) attributes {dimension_semantics = [#tpu.dimension_semantics<parallel>], iteration_bounds = array<i64: 1>, scalar_prefetch = 0 : i64, scratch_operands = 0 : i64, tpu.core_type = #tpu.core_type<tc>, window_params = [{transform_indices = @transform_0, window_bounds = array<i64: 8, 128>}, {pipeline_mode = #tpu.pipeline_mode<synchronous>, transform_indices = @transform_1, window_bounds = array<i64: 128, 128>}, {pipeline_mode = #tpu.pipeline_mode<synchronous>, transform_indices = @transform_2, window_bounds = array<i64: 1, 128>}, {pipeline_mode = #tpu.pipeline_mode<synchronous>, transform_indices = @transform_3, window_bounds = array<i64: 128, 128>}, {pipeline_mode = #tpu.pipeline_mode<synchronous>, transform_indices = @transform_4, window_bounds = array<i64: 1, 128>}, {transform_indices = @transform_5, window_bounds = array<i64: 8, 128>}]} {
    %c0 = arith.constant 0 : index
    %c0_0 = arith.constant 0 : index
    %0 = vector.load %arg1[%c0, %c0_0] : memref<8x128xf32, #tpu.memory_space<vmem>>, vector<8x128xf32>
    %c0_1 = arith.constant 0 : index
    %c0_2 = arith.constant 0 : index
    %1 = vector.load %arg2[%c0_1, %c0_2] : memref<128x128xbf16, #tpu.memory_space<vmem>>, vector<128x128xbf16>
    %c0_3 = arith.constant 0 : index
    %c0_4 = arith.constant 0 : index
    %2 = vector.load %arg3[%c0_3, %c0_4] : memref<1x128xf32, #tpu.memory_space<vmem>>, vector<1x128xf32>
    %3 = arith.truncf %0 : vector<8x128xf32> to vector<8x128xbf16>
    %cst = arith.constant dense<0.000000e+00> : vector<8x128xf32>
    %4 = tpu.matmul %3, %1, %cst {dimension_numbers = #tpu.dot_dimension_numbers<[1], [0], [0], [1], [0, 0, 1, 1], [], []>} : vector<8x128xbf16>, vector<128x128xbf16>, vector<8x128xf32> -> vector<8x128xf32>
    %5 = vector.broadcast %2 : vector<1x128xf32> to vector<8x128xf32>
    %6 = arith.addf %4, %5 : vector<8x128xf32>
    %cst_5 = arith.constant 0.000000e+00 : f32
    %7 = vector.broadcast %cst_5 : f32 to vector<8x128xf32>
    %8 = arith.maximumf %6, %7 : vector<8x128xf32>
    %c0_6 = arith.constant 0 : index
    %c0_7 = arith.constant 0 : index
    %9 = vector.load %arg4[%c0_6, %c0_7] : memref<128x128xbf16, #tpu.memory_space<vmem>>, vector<128x128xbf16>
    %c0_8 = arith.constant 0 : index
    %c0_9 = arith.constant 0 : index
    %10 = vector.load %arg5[%c0_8, %c0_9] : memref<1x128xf32, #tpu.memory_space<vmem>>, vector<1x128xf32>
    %11 = arith.truncf %8 : vector<8x128xf32> to vector<8x128xbf16>
    %cst_10 = arith.constant dense<0.000000e+00> : vector<8x128xf32>
    %12 = tpu.matmul %11, %9, %cst_10 {dimension_numbers = #tpu.dot_dimension_numbers<[1], [0], [0], [1], [0, 0, 1, 1], [], []>} : vector<8x128xbf16>, vector<128x128xbf16>, vector<8x128xf32> -> vector<8x128xf32>
    %13 = vector.broadcast %10 : vector<1x128xf32> to vector<8x128xf32>
    %14 = arith.addf %12, %13 : vector<8x128xf32>
    %15 = tpu.iota {dimensions = array<i32: 1>} : vector<8x128xi32>
    %c10_i32 = arith.constant 10 : i32
    %16 = vector.broadcast %c10_i32 : i32 to vector<8x128xi32>
    %17 = arith.cmpi slt, %15, %16 : vector<8x128xi32>
    %cst_11 = arith.constant -1.000000e+30 : f32
    %18 = vector.broadcast %cst_11 : f32 to vector<8x128xf32>
    %19 = arith.select %17, %14, %18 : vector<8x128xi1>, vector<8x128xf32>
    %cst_12 = arith.constant dense<0xFF800000> : vector<8xf32>
    %20 = vector.multi_reduction <maximumf>, %19, %cst_12 [1] : vector<8x128xf32> to vector<8xf32>
    %21 = vector.shape_cast %20 : vector<8xf32> to vector<8x1xf32>
    %22 = vector.broadcast %21 : vector<8x1xf32> to vector<8x128xf32>
    %23 = arith.subf %19, %22 : vector<8x128xf32>
    %24 = math.exp %23 : vector<8x128xf32>
    %cst_13 = arith.constant dense<0.000000e+00> : vector<8xf32>
    %25 = vector.multi_reduction <add>, %24, %cst_13 [1] : vector<8x128xf32> to vector<8xf32>
    %26 = vector.shape_cast %25 : vector<8xf32> to vector<8x1xf32>
    %27 = tpu.reciprocal %26 {approx = true} : vector<8x1xf32> -> vector<8x1xf32>
    %28 = vector.broadcast %27 : vector<8x1xf32> to vector<8x128xf32>
    %29 = arith.mulf %24, %28 : vector<8x128xf32>
    %c0_14 = arith.constant 0 : index
    %c0_15 = arith.constant 0 : index
    %30 = vector.load %arg6[%c0_14, %c0_15] : memref<8x128xf32, #tpu.memory_space<vmem>>, vector<8x128xf32>
    tpu.vector_store %arg6[%c0_14, %c0_15], %29 {strides = array<i32>} : memref<8x128xf32, #tpu.memory_space<vmem>>, vector<8x128xf32>,
    return
  }
  func.func @transform_0(%arg0: i32) -> (i32, i32) {
    %c0_i32 = arith.constant 0 : i32
    %c0_i32_0 = arith.constant 0 : i32
    return %arg0, %c0_i32 : i32, i32
  }
  func.func @transform_1(%arg0: i32) -> (i32, i32) {
    %c0_i32 = arith.constant 0 : i32
    %c0_i32_0 = arith.constant 0 : i32
    %c0_i32_1 = arith.constant 0 : i32
    return %c0_i32, %c0_i32_0 : i32, i32
  }
  func.func @transform_2(%arg0: i32) -> (i32, i32) {
    %c0_i32 = arith.constant 0 : i32
    %c0_i32_0 = arith.constant 0 : i32
    %c0_i32_1 = arith.constant 0 : i32
    return %c0_i32, %c0_i32_0 : i32, i32
  }
  func.func @transform_3(%arg0: i32) -> (i32, i32) {
    %c0_i32 = arith.constant 0 : i32
    %c0_i32_0 = arith.constant 0 : i32
    %c0_i32_1 = arith.constant 0 : i32
    return %c0_i32, %c0_i32_0 : i32, i32
  }
  func.func @transform_4(%arg0: i32) -> (i32, i32) {
    %c0_i32 = arith.constant 0 : i32
    %c0_i32_0 = arith.constant 0 : i32
    %c0_i32_1 = arith.constant 0 : i32
    return %c0_i32, %c0_i32_0 : i32, i32
  }
  func.func @transform_5(%arg0: i32) -> (i32, i32) {
    %c0_i32 = arith.constant 0 : i32
    %c0_i32_0 = arith.constant 0 : i32
    return %arg0, %c0_i32 : i32, i32
  }
}

</mosaic_0001>

<bundles_post_ra>
// kernel: tpu_custom_call.1
= control target key start
LH: loop header
LB: loop body
LE: loop exit
PB: predicated region body
PF: predicated region fallthrough
CT: control target
= control target key end

     0   :  { %10 = vsyncpa [#allocation3], 0  ;;  %s512_s0 = inlined_call_operand.hbm [shape: f32[8,128], index: 0, kind: input, shape index: {}]   ;;  %s513_s1 = inlined_call_operand.hbm [shape: bf16[128,128], index: 1, kind: input, shape index: {}]   ;;  %s514_s2 = inlined_call_operand.vmem [shape: f32[1,128], index: 2, kind: input, shape index: {}]   ;;  %s515_s3 = inlined_call_operand.hbm [shape: bf16[128,128], index: 3, kind: input, shape index: {}]   ;;  %s516_s4 = inlined_call_operand.vmem [shape: f32[1,128], index: 4, kind: input, shape index: {}]   ;;  %s517_s5 = inlined_call_operand.hbm [shape: f32[8,128], index: 5, kind: output, shape index: {}]  }
   0x1   :  { %11 = vsyncpa [#allocation6], 0  ;;  %s28_s20 = sshll.u32 %s513_s1, 4  ;;  %s29_s20 = int_to_ptr.hbm [resolvable:$true] %s28_s20 }
   0x2   :  { %12 = vsyncpa [#allocation4], 0  ;;  %s458_s21 = smov [#allocation5]   ;;  %s18_s25 = sshll.u32 %s512_s0, 4  ;;  %s19_s25 = int_to_ptr.hbm [resolvable:$true] %s18_s25 }
   0x3   :  { %s30_s22 = sshll.u32 %s458_s21, 4  ;;  %s459_s26 = smov 64   ;;  %s31_s22 = int_to_ptr.vmem [resolvable:$true] %s30_s22 }
   0x4   :  { %s460_s27 = smov 4   ;;  %s461_s28 = smov [#allocation2]  }
   0x5   :  { %36 = dma.hbm_to_vmem [thread:$0]  %s29_s20, 1024, %s31_s22, [#allocation6], %s459_s26, %s459_s26, %s460_s27  }
   0x6   :  { %s20_s29 = sshll.u32 %s461_s28, 4  ;;  %s43_s7 = sshll.u32 %s515_s3, 4  ;;  %s21_s29 = int_to_ptr.vmem [resolvable:$true] %s20_s29  ;;  %s44_s7 = int_to_ptr.hbm [resolvable:$true] %s43_s7 }
   0x7   :  { %23 = dma.hbm_to_vmem [thread:$0]  %s19_s25, 128, %s21_s29, [#allocation3]  }
   0x8   :  { %s462_s1 = smov [#allocation7]  }
   0x9   :  { %s45_s8 = sshll.u32 %s462_s1, 4  ;;  %s46_s8 = int_to_ptr.vmem [resolvable:$true] %s45_s8 }
   0xa   :  { %51 = dma.hbm_to_vmem [thread:$0]  %s44_s7, 1024, %s46_s8, [#allocation6], %s459_s26, %s459_s26, %s460_s27  }
   0xb   :  { %452 = dma.done.wait [#allocation3], 128  }
   0xc   :  { %453 = vsyncadd [#allocation3], 4294967168 }
   0xd   :  { %454 = dma.done.wait [#allocation6], 2048  }
   0xe   :  { %455 = vsyncadd [#allocation6], 4294965248  ;;  %v335_v0 = vld [vmem:[#allocation5 + $0x38] sm:$0xff]  ;;  %v334_v1 = vld [vmem:[#allocation5 + $0x30] sm:$0xff]  ;;  %v232_v24 = vlaneseq }
   0xf   :  { %136 = vmatpush.bf16.msra.mxu0 %v335_v0  ;;  %v343_v2 = vld [vmem:[#allocation7 + $0x38] sm:$0xff]  ;;  %v342_v3 = vld [vmem:[#allocation7 + $0x30] sm:$0xff]  ;;  %v333_v4 = vld [vmem:[#allocation5 + $0x28] sm:$0xff] }
  0x10   :  { %219 = vmatpush.bf16.msra.mxu1 %v343_v2  ;;  %v341_v5 = vld [vmem:[#allocation7 + $0x28] sm:$0xff]  ;;  %v332_v6 = vld [vmem:[#allocation5 + $0x20] sm:$0xff]  ;;  %v331_v8 = vld [vmem:[#allocation5 + $0x18] sm:$0xff]  ;;  %v233_v25 = vand.u32 127, %v232_v24 }
  0x11   :  { %v340_v7 = vld [vmem:[#allocation7 + $0x20] sm:$0xff]  ;;  %v339_v9 = vld [vmem:[#allocation7 + $0x18] sm:$0xff]  ;;  %v330_v10 = vld [vmem:[#allocation5 + $0x10] sm:$0xff] }
  0x12   :  { %v338_v11 = vld [vmem:[#allocation7 + $0x10] sm:$0xff]  ;;  %v329_v12 = vld [vmem:[#allocation5 + $0x8] sm:$0xff]  ;;  %v328_v13 = vld [vmem:[#allocation5] sm:$0xff]  ;;  %vm234_vm0 = vcmp.lt.s32.totalorder %v233_v25, 10 }
  0x13   :  { %137 = vmatpush.bf16.msra.mxu0 %v334_v1  ;;  %v66_v14 = vld [vmem:[#allocation2] sm:$0xff]  ;;  %v337_v16 = vld [vmem:[#allocation7 + $0x8] sm:$0xff]  ;;  %v336_v17 = vld [vmem:[#allocation7] sm:$0xff] }
  0x14   :  { %220 = vmatpush.bf16.msra.mxu1 %v342_v3  ;;  %v84_v15 = vpack.c.bf16 %v66_v14, %v66_v14  ;;  %v350_v18 = vld [vmem:[%s514_s2] ss:$0 sm:$0xff]  ;;  %s463_s2 = smov [#allocation8]  }
  0x15   :  { %v351_v26 = vld [vmem:[%s516_s4] ss:$0 sm:$0xff]  ;;  %s251_s11 = sshll.u32 %s463_s2, 4  ;;  %s253_s4 = sshll.u32 %s517_s5, 4  ;;  %s252_s11 = int_to_ptr.vmem [resolvable:$true] %s251_s11  ;;  %s254_s4 = int_to_ptr.hbm [resolvable:$true] %s253_s4 }
  0x17   :  { %138 = vmatpush.bf16.msra.mxu0 %v333_v4 }
  0x18   :  { %221 = vmatpush.bf16.msra.mxu1 %v341_v5 }
  0x1b   :  { %139 = vmatpush.bf16.msra.mxu0 %v332_v6 }
  0x1c   :  { %222 = vmatpush.bf16.msra.mxu1 %v340_v7 }
  0x1f   :  { %140 = vmatpush.bf16.msra.mxu0 %v331_v8 }
  0x20   :  { %223 = vmatpush.bf16.msra.mxu1 %v339_v9 }
  0x23   :  { %141 = vmatpush.bf16.msra.mxu0 %v330_v10 }
  0x24   :  { %224 = vmatpush.bf16.msra.mxu1 %v338_v11 }
  0x27   :  { %142 = vmatpush.bf16.msra.mxu0 %v329_v12 }
  0x28   :  { %225 = vmatpush.bf16.msra.mxu1 %v337_v16 }
  0x2b   :  { %143 = vmatpush.bf16.msra.mxu0 %v328_v13 }
  0x2c   :  { %226 = vmatpush.bf16.msra.mxu1 %v336_v17 }
  0x2e   :  { %144 = vmatmul.bf16.vlgmr.msra.gmra.mxu0 %v84_v15 }
  0xab   :  { %v145_v19 = vpop.f32.mrf.mxu0 }
  0xac   :  { %v146_v20 = vadd.f32 %v350_v18, %v145_v19 }
  0xae   :  { %v149_v21 = vmax.f32 %v146_v20, 0.0 }
  0xb0   :  { %v167_v22 = vpack.c.bf16 %v149_v21, %v149_v21 }
  0xb2   :  { %227 = vmatmul.bf16.vlgmr.msra.gmra.mxu1 %v167_v22 }
  0xb3   :  { %v147_v23 = vpop.f32.mrf.mxu0 }
 0x12f   :  { %v228_v27 = vpop.f32.mrf.mxu1 }
 0x130   :  { %v229_v28 = vadd.f32 %v351_v26, %v228_v27 }
 0x132   :  { %v235_v29 = vsel %vm234_vm0, %v229_v28, -1e+30 }
 0x133   :  { %236 = vmax.xlane.f32.xlu0 %v235_v29 }
 0x137   :  { %v230_v30 = vpop.f32.mrf.mxu1 }
 0x1a6   :  { %v237_v31 = vpop.xlane.xlu0 %236 }
 0x1a7   :  { %v238_v32 = vsub.f32 %v235_v29, %v237_v31 }
 0x1a9   :  { %v239_v33 = vmul.f32 1.442695, %v238_v32 }
 0x1ab   :  { %352 = vpow2.f32 %v239_v33 }
 0x1b1   :  { %v353_v34 = vpop.eup %352 }
 0x1b2   :  { %241 = vadd.xlane.f32.xlu0 %v353_v34 }
 0x225   :  { %v242_v35 = vpop.xlane.xlu0 %241 }
 0x226   :  { %354 = vrcp.f32 %v242_v35 }
 0x22c   :  { %v355_v36 = vpop.eup %354 }
 0x22d   :  { %v244_v37 = vmul.f32 %v355_v36, %v353_v34 }
 0x22f   :  { %245 = vst [vmem:[#allocation8] sm:$0xff] %v244_v37 }
 0x230   :  { %256 = dma.vmem_to_hbm [thread:$0]  %s252_s11, 128, %s254_s4, [#allocation4]  }
 0x231   :  { %456 = dma.done.wait [#allocation4], 128  }
 0x232   :  { %457 = vsyncadd [#allocation4], 4294967168 }
 0x233   :  { %261 = vsyncpa [#allocation3], 1 }
 0x234   :  { %262 = vsyncpa [#allocation6], 1 }
 0x235   :  { %263 = vsyncpa [#allocation4], 1 }

</bundles_post_ra>
